<compile_context>
chip_gen: v7x
topology: tpu7x:2x2x1
jax: 0.10.0
libtpu: 0.0.40
codegen_flags: <defaults>
</compile_context>

<pallas_src>
import functools

import jax
import jax.numpy as jnp
from jax.experimental import pallas as pl
from jax.experimental.pallas import tpu as pltpu

EMBED_DIM = 384      # fixed in the PyTorch module
NUM_CLASSES = 400    # default num_classes
BN_EPS = 1e-6

# Cap the batch-tile rows so the (TB, D) f32 reduce accumulator stays <= 24 vregs
# (64 * 384 * 4 B = 96 KiB) and never spills the 64-entry vreg file.
_MAX_BATCH_TILE = 64


def _vmem_plan():
    """Return (token-tile bytes per buffer, phase-1 vmem_limit_bytes) for this chip."""
    try:
        vmem_phys = pltpu.get_tpu_info().vmem_capacity_bytes
    except Exception:  # interpret mode / older runtimes -> conservative plan
        vmem_phys = 64 * 1024 * 1024
    if vmem_phys >= 96 * 1024 * 1024:
        # v5e / v6e (128 MiB physical VMEM): 16 MiB per buffer (32 MiB double-buffered)
        # keeps the ~0.35 us per-grid-step overhead well under 2% of the per-tile DMA.
        return 16 * 1024 * 1024, 64 * 1024 * 1024
    # v7x (64 MiB physical VMEM per TensorCore): 12 MiB per buffer (24 MiB double-
    # buffered) keeps step overhead ~5% at 3.2 TB/s while leaving plenty of headroom.
    return 12 * 1024 * 1024, 44 * 1024 * 1024


def _choose_batch_tile(batch, n_tokens, embed_dim, itemsize, tile_bytes):
    """Batch-tile rows: sublane-aligned (multiple of 8, or the full batch), bounded by
    the per-buffer VMEM budget and the vreg-pressure cap; prefers >= 2 tiles for B >= 16
    so `dimension_semantics=("parallel",)` can occupy both v7x TensorCores.  The grid is
    cdiv-based, so TB does NOT have to divide B (ragged last tile is masked)."""
    if batch <= 8:
        return batch
    bytes_per_row = n_tokens * embed_dim * itemsize
    budget_rows = max(8, (tile_bytes // bytes_per_row) // 8 * 8)
    tb = min(_MAX_BATCH_TILE, budget_rows)
    if batch >= 16:
        half = (((batch + 1) // 2) + 7) // 8 * 8
        tb = min(tb, half)
    return max(8, min(tb, (batch + 7) // 8 * 8))


def _pool_kernel(tok_ref, pooled_ref, *, inv_patches):
    # tok_ref:    (TB, N, D) bf16/f32 -- one batch tile of backbone tokens (cls at index 0)
    # pooled_ref: (TB, D)    f32      -- mean over the N-1 patch tokens
    TB, N, D = tok_ref.shape
    CH = 16  # sublane chunk: one packed bf16 row-group (2 vregs worth of rows for f32)
    n_full = N // CH
    acc = jnp.zeros((TB, D), jnp.float32)
    if n_full > 0:
        def body(i, acc):
            start = pl.multiple_of(i * CH, CH)
            chunk = tok_ref[:, pl.ds(start, CH), :].astype(jnp.float32)
            return acc + jnp.sum(chunk, axis=1)
        acc = jax.lax.fori_loop(0, n_full, body, acc)
    rem = N - n_full * CH
    if rem > 0:
        chunk = tok_ref[:, pl.ds(n_full * CH, rem), :].astype(jnp.float32)
        acc = acc + jnp.sum(chunk, axis=1)
    # Sum of ALL tokens minus the cls row == sum of patch tokens (exact in f32).
    cls = tok_ref[:, 0, :].astype(jnp.float32)
    pooled_ref[...] = (acc - cls) * inv_patches


def _head_kernel(pooled_ref, w_ref, b_ref, o_ref):
    # pooled_ref: (B, D)    f32
    # w_ref:      (D, Cpad) f32  -- head Linear weight, transposed + zero-padded classes
    # b_ref:      (1, Cpad) f32
    # o_ref:      (B, Cpad) f32
    x = pooled_ref[...]
    # BatchNorm1d(affine=False, eps=1e-6), training-mode batch stats, biased variance.
    mu = jnp.mean(x, axis=0, keepdims=True)
    var = jnp.mean(jnp.square(x - mu), axis=0, keepdims=True)
    xn = (x - mu) * jax.lax.rsqrt(var + BN_EPS)
    # f32 MXU inputs: this matmul is tiny (B x 384 x 512), so f32 costs ~nothing and
    # stays numerically close to the f32 PyTorch head.
    o_ref[...] = (
        jnp.dot(xn, w_ref[...], preferred_element_type=jnp.float32) + b_ref[...]
    )


def linear_probing_forward(tokens, weight, bias):
    """tokens: (B, N, D) backbone tokens (cls first), bf16 or f32; weight: (C, D) f32;
    bias: (C,) f32.  Returns (B, C) f32 logits."""
    B, N, D = tokens.shape
    C = weight.shape[0]
    assert weight.shape == (C, D) and bias.shape == (C,)
    assert N >= 2, "need at least one patch token besides the cls token"

    # ---- phase 1: batch-tiled, pipelined mean pooling over patch tokens --------------
    tile_bytes, vmem_limit = _vmem_plan()
    TB = _choose_batch_tile(B, N, D, jnp.dtype(tokens.dtype).itemsize, tile_bytes)
    grid_b = pl.cdiv(B, TB)
    pooled = pl.pallas_call(
        functools.partial(_pool_kernel, inv_patches=1.0 / (N - 1)),
        out_shape=jax.ShapeDtypeStruct((B, D), jnp.float32),
        grid=(grid_b,),
        in_specs=[pl.BlockSpec((TB, N, D), lambda i: (i, 0, 0))],
        out_specs=pl.BlockSpec((TB, D), lambda i: (i, 0)),
        compiler_params=pltpu.CompilerParams(
            # batch tiles are independent -> shard across the 2 TensorCores on v7x
            dimension_semantics=("parallel",),
            vmem_limit_bytes=vmem_limit,
        ),
    )(tokens)

    # ---- phase 2: exact cross-batch BN stats + normalize + matmul (VMEM-resident) ----
    # Pad classes to a multiple of 128: unmasked lane-dense stores + clean MXU N tiles.
    c_pad = ((C + 127) // 128) * 128
    w_t = jnp.zeros((D, c_pad), jnp.float32).at[:, :C].set(weight.T.astype(jnp.float32))
    b2 = jnp.zeros((1, c_pad), jnp.float32).at[:, :C].set(bias.astype(jnp.float32))
    logits_padded = pl.pallas_call(
        _head_kernel,
        out_shape=jax.ShapeDtypeStruct((B, c_pad), jnp.float32),
        compiler_params=pltpu.CompilerParams(vmem_limit_bytes=48 * 1024 * 1024),
    )(pooled, w_t, b2)
    return logits_padded[:, :C]


def init_head_params(key):
    """Deterministic head init mirroring the PyTorch module:
    - Linear weight: trunc_normal_(std=0.01) truncated at +/- 2 std
    - Linear bias:   PyTorch default uniform(-1/sqrt(fan_in), 1/sqrt(fan_in))
    """
    kw, kb = jax.random.split(key)
    w = 0.01 * jax.random.truncated_normal(
        kw, -2.0, 2.0, (NUM_CLASSES, EMBED_DIM), dtype=jnp.float32
    )
    bound = 1.0 / (EMBED_DIM ** 0.5)
    b = jax.random.uniform(
        kb, (NUM_CLASSES,), minval=-bound, maxval=bound, dtype=jnp.float32
    )
    return w, b


def reference_forward(tokens_f32, weight, bias):
    pooled = jnp.mean(tokens_f32[:, 1:, :], axis=1)
    mu = jnp.mean(pooled, axis=0, keepdims=True)
    var = jnp.mean((pooled - mu) ** 2, axis=0, keepdims=True)
    xn = (pooled - mu) * jax.lax.rsqrt(var + BN_EPS)
    return xn @ weight.T + bias


if __name__ == "__main__":
    key = jax.random.PRNGKey(0)
    k_tok, k_head = jax.random.split(key)

    B, N = 8, 9  # small: 8 samples, 1 cls token + 8 patch tokens
    tokens_f32 = jax.random.normal(k_tok, (B, N, EMBED_DIM), dtype=jnp.float32)
    # Backbone activations stream in as bf16: halves the HBM traffic of the
    # bandwidth-bound pooling phase; the kernel accumulates in f32.
    tokens = tokens_f32.astype(jnp.bfloat16)

    weight, bias = init_head_params(k_head)

    out = linear_probing_forward(tokens, weight, bias)
    out = jax.block_until_ready(out)

    # Reference sees the same bf16-rounded token values (cast back to f32), so only
    # computation-order / MXU-pass differences remain -> tight tolerance.
    ref = reference_forward(tokens.astype(jnp.float32), weight, bias)
    assert out.shape == (B, NUM_CLASSES)
    max_err = float(jnp.max(jnp.abs(out - ref)))
    assert jnp.allclose(out, ref, atol=5e-3, rtol=5e-3), (
        f"mismatch vs reference (max abs err {max_err})"
    )

    print("KERNEL_OK")
</pallas_src>

<mosaic_0001>
module attributes {stable_mosaic.version = 11 : i64} {
  func.func @_pool_kernel(%arg0: i32, %arg1: memref<8x9x384xbf16, #tpu.memory_space<vmem>>, %arg2: memref<8x384xf32, #tpu.memory_space<vmem>>) attributes {dimension_semantics = [#tpu.dimension_semantics<parallel>], iteration_bounds = array<i64: 1>, scalar_prefetch = 0 : i64, scratch_operands = 0 : i64, tpu.core_type = #tpu.core_type<tc>, window_params = [{transform_indices = @transform_0, window_bounds = array<i64: 8, 9, 384>}, {transform_indices = @transform_1, window_bounds = array<i64: 8, 384>}]} {
    %cst = arith.constant 0.000000e+00 : f32
    %0 = vector.broadcast %cst : f32 to vector<8x384xf32>
    %c0 = arith.constant 0 : index
    %c0_0 = arith.constant 0 : index
    %c0_1 = arith.constant 0 : index
    %1 = vector.load %arg1[%c0, %c0_0, %c0_1] : memref<8x9x384xbf16, #tpu.memory_space<vmem>>, vector<8x9x384xbf16>
    %2 = arith.extf %1 : vector<8x9x384xbf16> to vector<8x9x384xf32>
    %cst_2 = arith.constant dense<0.000000e+00> : vector<8x384xf32>
    %3 = vector.multi_reduction <add>, %2, %cst_2 [1] : vector<8x9x384xf32> to vector<8x384xf32>
    %4 = arith.addf %0, %3 : vector<8x384xf32>
    %c0_3 = arith.constant 0 : index
    %c0_4 = arith.constant 0 : index
    %c0_5 = arith.constant 0 : index
    %5 = vector.load %arg1[%c0_3, %c0_4, %c0_5] : memref<8x9x384xbf16, #tpu.memory_space<vmem>>, vector<8x1x384xbf16>
    %6 = vector.shape_cast %5 : vector<8x1x384xbf16> to vector<8x384xbf16>
    %7 = arith.extf %6 : vector<8x384xbf16> to vector<8x384xf32>
    %8 = arith.subf %4, %7 : vector<8x384xf32>
    %cst_6 = arith.constant 1.250000e-01 : f32
    %9 = vector.broadcast %cst_6 : f32 to vector<8x384xf32>
    %10 = arith.mulf %8, %9 : vector<8x384xf32>
    %c0_7 = arith.constant 0 : index
    %c0_8 = arith.constant 0 : index
    %11 = vector.load %arg2[%c0_7, %c0_8] : memref<8x384xf32, #tpu.memory_space<vmem>>, vector<8x384xf32>
    tpu.vector_store %arg2[%c0_7, %c0_8], %10 {strides = array<i32>} : memref<8x384xf32, #tpu.memory_space<vmem>>, vector<8x384xf32>,
    return
  }
  func.func @transform_0(%arg0: i32) -> (i32, i32, i32) {
    %c0_i32 = arith.constant 0 : i32
    %c0_i32_0 = arith.constant 0 : i32
    %c0_i32_1 = arith.constant 0 : i32
    return %arg0, %c0_i32, %c0_i32_0 : i32, i32, i32
  }
  func.func @transform_1(%arg0: i32) -> (i32, i32) {
    %c0_i32 = arith.constant 0 : i32
    %c0_i32_0 = arith.constant 0 : i32
    return %arg0, %c0_i32 : i32, i32
  }
}

</mosaic_0001>

<bundles_post_ra>
// kernel: tpu_custom_call.1
= control target key start
LH: loop header
LB: loop body
LE: loop exit
PB: predicated region body
PF: predicated region fallthrough
CT: control target
= control target key end

     0   :  { %6 = vsyncpa [#allocation3], 0  ;;  %vm89_vm0 = vcmask 1040384   ;;  %vm419_vm1 = vcmask 1041409   ;;  %vm422_vm2 = vcmask 1042434   ;;  %vm425_vm3 = vcmask 1043459   ;;  %s966_s0 = inlined_call_operand.vmem [shape: bf16[8,9,384], index: 0, kind: input, shape index: {}]   ;;  %s967_s1 = inlined_call_operand.hbm [shape: f32[8,384], index: 1, kind: output, shape index: {}]  }
   0x1   :  { %v526_v0 = vld [vmem:[%s966_s0] sm:$0xff]  ;;  %v536_v2 = vld [vmem:[%s966_s0 + $0xc] sm:$0x11]  ;;  %v541_v3 = vld [vmem:[%s966_s0 + $0x14] sm:$0x1]  ;;  %vm428_vm4 = vcmask 1044484  }
   0x2   :  { %v531_v1 = vld [vmem:[%s966_s0 + $0x8] ss:$24 sps:$4 sm:$0xff]   ;;  %v546_v4 = vld [vmem:[%s966_s0 + $0x18] sm:$0xff]  ;;  %v41_v5 = vunpack.c.l.bf16 %v526_v0  ;;  %v42_v6 = vunpack.c.h.bf16 %v526_v0  ;;  %v560_v10 = vld [vmem:[%s966_s0 + $0x2c] sm:$0x1]  ;;  %v44_v12 = vunpack.c.l.bf16 %v536_v2  ;;  %v45_v13 = vunpack.c.h.bf16 %v536_v2 }
   0x3   :  { %v43_v7 = vunpack.c.l.bf16 %v531_v1  ;;  %v49_v8 = vunpack.c.h.bf16 %v531_v1  ;;  %v555_v9 = vld [vmem:[%s966_s0 + $0x24] sm:$0x11]  ;;  %v565_v11 = vld [vmem:[%s966_s0 + $0x30] sm:$0xff]  ;;  %v46_v14 = vunpack.c.l.bf16 %v541_v3  ;;  %v47_v15 = vunpack.c.l.bf16 %v546_v4  ;;  %v579_v17 = vld [vmem:[%s966_s0 + $0x3c] sm:$0x11] }
   0x4   :  { %v574_v16 = vld [vmem:[%s966_s0 + $0x38] ss:$24 sps:$4 sm:$0xff]   ;;  %v584_v18 = vld [vmem:[%s966_s0 + $0x44] sm:$0x1]  ;;  %v48_v19 = vunpack.c.h.bf16 %v546_v4  ;;  %v50_v20 = vunpack.c.l.bf16 %v555_v9  ;;  %v51_v21 = vunpack.c.h.bf16 %v555_v9  ;;  %v52_v22 = vunpack.c.l.bf16 %v560_v10  ;;  %v593_v23 = vld [vmem:[%s966_s0 + $0x48] sm:$0xff] }
   0x5   :  { %v598_v24 = vld [vmem:[%s966_s0 + $0x54] sm:$0x11]  ;;  %v603_v25 = vld [vmem:[%s966_s0 + $0x5c] sm:$0x1]  ;;  %v53_v26 = vunpack.c.l.bf16 %v565_v11  ;;  %v54_v27 = vunpack.c.h.bf16 %v565_v11  ;;  %v55_v28 = vunpack.c.l.bf16 %v574_v16  ;;  %v56_v29 = vunpack.c.l.bf16 %v579_v17  ;;  %v612_v30 = vld [vmem:[%s966_s0 + $0x60] sm:$0xff] }
   0x6   :  { %v617_v31 = vld [vmem:[%s966_s0 + $0x68] ss:$24 sps:$4 sm:$0xff]   ;;  %v622_v32 = vld [vmem:[%s966_s0 + $0x6c] sm:$0x11]  ;;  %v57_v33 = vunpack.c.h.bf16 %v579_v17  ;;  %v58_v34 = vunpack.c.l.bf16 %v584_v18  ;;  %v59_v35 = vunpack.c.l.bf16 %v593_v23  ;;  %v60_v36 = vunpack.c.h.bf16 %v593_v23  ;;  %v631_v37 = vld [vmem:[%s966_s0 + $0x74] sm:$0x1] }
   0x7   :  { %v636_v38 = vld [vmem:[%s966_s0 + $0x78] sm:$0xff]  ;;  %v641_v39 = vld [vmem:[%s966_s0 + $0x84] sm:$0x11]  ;;  %v61_v40 = vunpack.c.h.bf16 %v574_v16  ;;  %v62_v41 = vunpack.c.l.bf16 %v598_v24  ;;  %v63_v42 = vunpack.c.h.bf16 %v598_v24  ;;  %v64_v43 = vunpack.c.l.bf16 %v603_v25  ;;  %v650_v44 = vld [vmem:[%s966_s0 + $0x8c] sm:$0x1] }
   0x8   :  { %v655_v45 = vld [vmem:[%s966_s0 + $0x90] sm:$0xff]  ;;  %v68_v50 = vunpack.c.l.bf16 %v622_v32  ;;  %v669_v51 = vld [vmem:[%s966_s0 + $0x9c] sm:$0x11]  ;;  %v674_v52 = vld [vmem:[%s966_s0 + $0xa4] sm:$0x1]  ;;  %v90_v56 = vsel %vm89_vm0, %v44_v12, 0.0 }
   0x9   :  { %v660_v46 = vld [vmem:[%s966_s0 + $0x98] ss:$24 sps:$4 sm:$0xff]   ;;  %v679_v53 = vld [vmem:[%s966_s0 + $0xa8] sm:$0xff]  ;;  %v693_v59 = vld [vmem:[%s966_s0 + $0xbc] sm:$0x1]  ;;  %v98_v47 = vsel %vm89_vm0, %v45_v13, 0.0  ;;  %v91_v60 = vadd.f32 %v90_v56, %v41_v5 }
   0xa   :  { %v688_v58 = vld [vmem:[%s966_s0 + $0xb4] sm:$0x11]  ;;  %v106_v61 = vsel %vm89_vm0, %v46_v14, 0.0  ;;  %v114_v62 = vsel %vm89_vm0, %v50_v20, 0.0  ;;  %v99_v57 = vadd.f32 %v98_v47, %v42_v6  ;;  %v122_v3 = vsel %vm89_vm0, %v51_v21, 0.0 }
   0xb   :  { %v107_v17 = vadd.f32 %v106_v61, %v43_v7  ;;  %v115_v2 = vadd.f32 %v114_v62, %v47_v15  ;;  %v130_v12 = vsel %vm89_vm0, %v52_v22, 0.0  ;;  %v138_v13 = vsel %vm89_vm0, %v56_v29, 0.0 }
   0xc   :  { %v146_v5 = vsel %vm89_vm0, %v57_v33, 0.0  ;;  %v92_v0 = vrot.slane %v91_v60, 4  ;;  %v100_v6 = vrot.slane %v99_v57, 4  ;;  %v123_v7 = vadd.f32 %v122_v3, %v48_v19 }
   0xd   :  { %v108_v14 = vrot.slane %v107_v17, 4  ;;  %v116_v20 = vrot.slane %v115_v2, 4  ;;  %v131_v9 = vadd.f32 %v130_v12, %v49_v8  ;;  %v139_v15 = vadd.f32 %v138_v13, %v53_v26 }
   0xe   :  { %v147_v10 = vadd.f32 %v146_v5, %v54_v27  ;;  %v93_v21 = vadd.f32 %v92_v0, %v91_v60  ;;  %v101_v22 = vadd.f32 %v100_v6, %v99_v57  ;;  %v124_v47 = vrot.slane %v123_v7, 4 }
   0xf   :  { %v109_v29 = vadd.f32 %v108_v14, %v107_v17  ;;  %v117_v33 = vadd.f32 %v116_v20, %v115_v2  ;;  %v132_v56 = vrot.slane %v131_v9, 4  ;;  %v140_v61 = vrot.slane %v139_v15, 4 }
  0x10   :  { %v148_v62 = vrot.slane %v147_v10, 4  ;;  %v94_v63 = vrot.slane %v93_v21, 2  ;;  %v102_v4 = vrot.slane %v101_v22, 2  ;;  %v125_v1 = vadd.f32 %v124_v47, %v123_v7 }
  0x11   :  { %v110_v19 = vrot.slane %v109_v29, 2  ;;  %v118_v3 = vrot.slane %v117_v33, 2  ;;  %v133_v8 = vadd.f32 %v132_v56, %v131_v9  ;;  %v141_v12 = vadd.f32 %v140_v61, %v139_v15 }
  0x12   :  { %v149_v48 = vadd.f32 %v148_v62, %v147_v10  ;;  %v95_v26 = vadd.f32 %v94_v63, %v93_v21  ;;  %v103_v13 = vadd.f32 %v102_v4, %v101_v22  ;;  %v126_v60 = vrot.slane %v125_v1, 2 }
  0x13   :  { %v111_v11 = vadd.f32 %v110_v19, %v109_v29  ;;  %v119_v27 = vadd.f32 %v118_v3, %v117_v33  ;;  %v134_v57 = vrot.slane %v133_v8, 2  ;;  %v142_v17 = vrot.slane %v141_v12, 2 }
  0x14   :  { %v150_v2 = vrot.slane %v149_v48, 2  ;;  %v96_v5 = vrot.slane %v95_v26, 1  ;;  %v104_v0 = vrot.slane %v103_v13, 1  ;;  %v127_v20 = vadd.f32 %v126_v60, %v125_v1 }
  0x15   :  { %v112_v6 = vrot.slane %v111_v11, 1  ;;  %v120_v14 = vrot.slane %v119_v27, 1  ;;  %v135_v49 = vadd.f32 %v134_v57, %v133_v8  ;;  %v143_v55 = vadd.f32 %v142_v17, %v141_v12 }
  0x16   :  { %v151_v54 = vadd.f32 %v150_v2, %v149_v48  ;;  %v745_v7 = vadd.f32 %v96_v5, %v95_v26  ;;  %v747_v9 = vadd.f32 %v104_v0, %v103_v13  ;;  %v128_v10 = vrot.slane %v127_v20, 1 }
  0x17   :  { %v749_v63 = vadd.f32 %v112_v6, %v111_v11  ;;  %v751_v15 = vadd.f32 %v120_v14, %v119_v27  ;;  %v136_v21 = vrot.slane %v135_v49, 1  ;;  %v144_v22 = vrot.slane %v143_v55, 1 }
  0x18   :  { %v152_v29 = vrot.slane %v151_v54, 1  ;;  %v154_v33 = vsel %vm89_vm0, %v58_v34, 0.0  ;;  %v162_v48 = vsel %vm89_vm0, %v62_v41, 0.0  ;;  %v170_v47 = vsel %vm89_vm0, %v63_v42, 0.0 }
  0x19   :  { %v178_v56 = vsel %vm89_vm0, %v64_v43, 0.0  ;;  %v765_v61 = vadd.f32 %v128_v10, %v127_v20  ;;  %v767_v62 = vadd.f32 %v136_v21, %v135_v49  ;;  %v769_v4 = vadd.f32 %v144_v22, %v143_v55 }
  0x1a   :  { %v771_v18 = vadd.f32 %v152_v29, %v151_v54  ;;  %v155_v34 = vadd.f32 %v154_v33, %v55_v28  ;;  %v163_v24 = vadd.f32 %v162_v48, %v59_v35  ;;  %v171_v41 = vadd.f32 %v170_v47, %v60_v36 }
  0x1b   :  { %v179_v25 = vadd.f32 %v178_v56, %v61_v40  ;;  %v186_v42 = vsel %vm89_vm0, %v68_v50, 0.0  ;;  %v968_v43 = vunpack.c.h.bf16 %v622_v32  ;;  %v969_v54 = vunpack.c.l.bf16 %v631_v37 }
  0x1c   :  { %v970_v35 = vunpack.c.l.bf16 %v641_v39  ;;  %v156_v36 = vrot.slane %v155_v34, 4  ;;  %v164_v55 = vrot.slane %v163_v24, 4  ;;  %v172_v16 = vrot.slane %v171_v41, 4 }
  0x1d   :  { %v194_v49 = vsel %vm89_vm0, %v968_v43, 0.0  ;;  %v202_v28 = vsel %vm89_vm0, %v969_v54, 0.0  ;;  %v180_v40 = vrot.slane %v179_v25, 4  ;;  %v971_v19 = vunpack.c.l.bf16 %v612_v30 }
  0x1e   :  { %v210_v23 = vsel %vm89_vm0, %v970_v35, 0.0  ;;  %v972_v50 = vunpack.c.h.bf16 %v612_v30  ;;  %v973_v1 = vunpack.c.l.bf16 %v617_v31  ;;  %v974_v37 = vunpack.c.l.bf16 %v636_v38 }
  0x1f   :  { %v187_v3 = vadd.f32 %v186_v42, %v971_v19  ;;  %v157_v26 = vadd.f32 %v156_v36, %v155_v34  ;;  %v165_v13 = vadd.f32 %v164_v55, %v163_v24  ;;  %v173_v11 = vadd.f32 %v172_v16, %v171_v41 }
  0x20   :  { %v195_v32 = vadd.f32 %v194_v49, %v972_v50  ;;  %v203_v8 = vadd.f32 %v202_v28, %v973_v1  ;;  %v211_v12 = vadd.f32 %v210_v23, %v974_v37  ;;  %v181_v27 = vadd.f32 %v180_v40, %v179_v25 }
  0x21   :  { %v188_v60 = vrot.slane %v187_v3, 4  ;;  %v158_v5 = vrot.slane %v157_v26, 2  ;;  %v166_v0 = vrot.slane %v165_v13, 2  ;;  %v174_v6 = vrot.slane %v173_v11, 2 }
  0x22   :  { %v196_v57 = vrot.slane %v195_v32, 4  ;;  %v204_v17 = vrot.slane %v203_v8, 4  ;;  %v212_v2 = vrot.slane %v211_v12, 4  ;;  %v182_v14 = vrot.slane %v181_v27, 2 }
  0x23   :  { %v189_v30 = vadd.f32 %v188_v60, %v187_v3  ;;  %v159_v22 = vadd.f32 %v158_v5, %v157_v26  ;;  %v167_v29 = vadd.f32 %v166_v0, %v165_v13  ;;  %v175_v33 = vadd.f32 %v174_v6, %v173_v11 }
  0x24   :  { %v197_v20 = vadd.f32 %v196_v57, %v195_v32  ;;  %v205_v10 = vadd.f32 %v204_v17, %v203_v8  ;;  %v213_v21 = vadd.f32 %v212_v2, %v211_v12  ;;  %v183_v48 = vadd.f32 %v182_v14, %v181_v27 }
  0x25   :  { %v190_v47 = vrot.slane %v189_v30, 2  ;;  %v160_v41 = vrot.slane %v159_v22, 1  ;;  %v168_v25 = vrot.slane %v167_v29, 1  ;;  %v176_v42 = vrot.slane %v175_v33, 1 }
  0x26   :  { %v198_v56 = vrot.slane %v197_v20, 2  ;;  %v206_v34 = vrot.slane %v205_v10, 2  ;;  %v214_v24 = vrot.slane %v213_v21, 2  ;;  %v184_v43 = vrot.slane %v183_v48, 1 }
  0x27   :  { %v191_v49 = vadd.f32 %v190_v47, %v189_v30  ;;  %v801_v23 = vadd.f32 %v160_v41, %v159_v22  ;;  %v803_v36 = vadd.f32 %v168_v25, %v167_v29  ;;  %v805_v55 = vadd.f32 %v176_v42, %v175_v33 }
  0x28   :  { %v199_v54 = vadd.f32 %v198_v56, %v197_v20  ;;  %v207_v28 = vadd.f32 %v206_v34, %v205_v10  ;;  %v215_v35 = vadd.f32 %v214_v24, %v213_v21  ;;  %v807_v16 = vadd.f32 %v184_v43, %v183_v48 }
  0x29   :  { %v192_v40 = vrot.slane %v191_v49, 1  ;;  %v975_v32 = vunpack.c.h.bf16 %v641_v39  ;;  %v976_v8 = vunpack.c.l.bf16 %v650_v44  ;;  %v977_v12 = vunpack.c.l.bf16 %v669_v51 }
  0x2a   :  { %v200_v19 = vrot.slane %v199_v54, 1  ;;  %v208_v3 = vrot.slane %v207_v28, 1  ;;  %v216_v50 = vrot.slane %v215_v35, 1  ;;  %v978_v13 = vunpack.c.h.bf16 %v669_v51 }
  0x2b   :  { %v218_v1 = vsel %vm89_vm0, %v975_v32, 0.0  ;;  %v226_v37 = vsel %vm89_vm0, %v976_v8, 0.0  ;;  %v234_v26 = vsel %vm89_vm0, %v977_v12, 0.0  ;;  %v821_v27 = vadd.f32 %v192_v40, %v191_v49 }
  0x2c   :  { %v242_v11 = vsel %vm89_vm0, %v978_v13, 0.0  ;;  %v823_v60 = vadd.f32 %v200_v19, %v199_v54  ;;  %v825_v57 = vadd.f32 %v208_v3, %v207_v28  ;;  %v827_v39 = vadd.f32 %v216_v50, %v215_v35 }
  0x2d   :  { %v979_v44 = vunpack.c.h.bf16 %v636_v38  ;;  %v980_v2 = vunpack.c.h.bf16 %v617_v31  ;;  %v981_v0 = vunpack.c.l.bf16 %v655_v45  ;;  %v982_v51 = vunpack.c.h.bf16 %v655_v45 }
  0x2e   :  { %v983_v30 = vunpack.c.l.bf16 %v674_v52  ;;  %v984_v10 = vunpack.c.l.bf16 %v688_v58  ;;  %v985_v38 = vunpack.c.h.bf16 %v688_v58  ;;  %v986_v31 = vunpack.c.l.bf16 %v693_v59 }
  0x2f   :  { %v219_v17 = vadd.f32 %v218_v1, %v979_v44  ;;  %v227_v5 = vadd.f32 %v226_v37, %v980_v2  ;;  %v235_v6 = vadd.f32 %v234_v26, %v981_v0  ;;  %v243_v14 = vadd.f32 %v242_v11, %v982_v51 }
  0x30   :  { %v250_v20 = vsel %vm89_vm0, %v983_v30, 0.0  ;;  %v258_v21 = vsel %vm89_vm0, %v984_v10, 0.0  ;;  %v266_v22 = vsel %vm89_vm0, %v985_v38, 0.0  ;;  %v274_v29 = vsel %vm89_vm0, %v986_v31, 0.0  ;;  %v306_v38 = vld [vmem:[%s966_s0] sm:$0x11] }
  0x31   :  { %v220_v33 = vrot.slane %v219_v17, 4  ;;  %v228_v48 = vrot.slane %v227_v5, 4  ;;  %v236_v45 = vrot.slane %v235_v6, 4  ;;  %v244_v47 = vrot.slane %v243_v14, 4  ;;  %v308_v31 = vld [vmem:[%s966_s0 + $0x18] sm:$0x11] }
  0x32   :  { %v987_v52 = vunpack.c.l.bf16 %v660_v46  ;;  %v988_v34 = vunpack.c.l.bf16 %v679_v53  ;;  %v989_v41 = vunpack.c.h.bf16 %v679_v53  ;;  %v990_v58 = vunpack.c.h.bf16 %v660_v46 }
  0x33   :  { %v221_v43 = vadd.f32 %v220_v33, %v219_v17  ;;  %v229_v59 = vadd.f32 %v228_v48, %v227_v5  ;;  %v237_v49 = vadd.f32 %v236_v45, %v235_v6  ;;  %v245_v54 = vadd.f32 %v244_v47, %v243_v14  ;;  %v309_v47 = vld [vmem:[%s966_s0 + $0x20] sm:$0x1] }
  0x34   :  { %v251_v56 = vadd.f32 %v250_v20, %v987_v52  ;;  %v259_v24 = vadd.f32 %v258_v21, %v988_v34  ;;  %v267_v25 = vadd.f32 %v266_v22, %v989_v41  ;;  %v275_v42 = vadd.f32 %v274_v29, %v990_v58  ;;  %v307_v22 = vld [vmem:[%s966_s0 + $0x8] sm:$0x1]  ;;  %v310_v41 = vld [vmem:[%s966_s0 + $0x30] sm:$0x11] }
  0x35   :  { %v222_v3 = vrot.slane %v221_v43, 2  ;;  %v230_v50 = vrot.slane %v229_v59, 2  ;;  %v238_v32 = vrot.slane %v237_v49, 2  ;;  %v246_v1 = vrot.slane %v245_v54, 2  ;;  %v312_v58 = vld [vmem:[%s966_s0 + $0x48] sm:$0x11] }
  0x36   :  { %v252_v28 = vrot.slane %v251_v56, 4  ;;  %v260_v35 = vrot.slane %v259_v24, 4  ;;  %v268_v40 = vrot.slane %v267_v25, 4  ;;  %v276_v19 = vrot.slane %v275_v42, 4 }
  0x37   :  { %v223_v26 = vadd.f32 %v222_v3, %v221_v43  ;;  %v231_v13 = vadd.f32 %v230_v50, %v229_v59  ;;  %v239_v46 = vadd.f32 %v238_v32, %v237_v49  ;;  %v247_v11 = vadd.f32 %v246_v1, %v245_v54  ;;  %v314_v3 = vld [vmem:[%s966_s0 + $0x60] sm:$0x11]  ;;  %v315_v50 = vld [vmem:[%s966_s0 + $0x68] sm:$0x1]  ;;  %v316_v32 = vld [vmem:[%s966_s0 + $0x78] sm:$0x11] }
  0x38   :  { %v253_v8 = vadd.f32 %v252_v28, %v251_v56  ;;  %v261_v37 = vadd.f32 %v260_v35, %v259_v24  ;;  %v269_v12 = vadd.f32 %v268_v40, %v267_v25  ;;  %v277_v53 = vadd.f32 %v276_v19, %v275_v42  ;;  %v311_v25 = vld [vmem:[%s966_s0 + $0x38] sm:$0x1]  ;;  %v313_v42 = vld [vmem:[%s966_s0 + $0x50] sm:$0x1]  ;;  %v317_v1 = vld [vmem:[%s966_s0 + $0x80] sm:$0x1] }
  0x39   :  { %v224_v0 = vrot.slane %v223_v26, 1  ;;  %v232_v6 = vrot.slane %v231_v13, 1  ;;  %v240_v51 = vrot.slane %v239_v46, 1  ;;  %v248_v14 = vrot.slane %v247_v11, 1 }
  0x3a   :  { %v254_v44 = vrot.slane %v253_v8, 2  ;;  %v262_v17 = vrot.slane %v261_v37, 2  ;;  %v270_v2 = vrot.slane %v269_v12, 2  ;;  %v278_v5 = vrot.slane %v277_v53, 2 }
  0x3b   :  { %v866_v29 = vadd.f32 %v224_v0, %v223_v26  ;;  %v868_v33 = vadd.f32 %v232_v6, %v231_v13  ;;  %v870_v48 = vadd.f32 %v240_v51, %v239_v46  ;;  %v872_v45 = vadd.f32 %v248_v14, %v247_v11  ;;  %v319_v13 = vld [vmem:[%s966_s0 + $0x98] sm:$0x1]  ;;  %v320_v46 = vld [vmem:[%s966_s0 + $0xa8] sm:$0x11]  ;;  %v321_v11 = vld [vmem:[%s966_s0 + $0xb0] sm:$0x1] }
  0x3c   :  { %v255_v30 = vadd.f32 %v254_v44, %v253_v8  ;;  %v263_v20 = vadd.f32 %v262_v17, %v261_v37  ;;  %v271_v10 = vadd.f32 %v270_v2, %v269_v12  ;;  %v279_v21 = vadd.f32 %v278_v5, %v277_v53  ;;  %v318_v8 = vld [vmem:[%s966_s0 + $0x90] sm:$0x11]  ;;  %s512_s0 = smov [#allocation2]  }
  0x3d   :  { %v322_v43 = vunpack.c.l.bf16 %v306_v38  ;;  %v323_v59 = vunpack.c.h.bf16 %v306_v38  ;;  %v324_v49 = vunpack.c.l.bf16 %v307_v22  ;;  %v325_v54 = vunpack.c.l.bf16 %v308_v31  ;;  %s479_s7 = sshll.u32 %s512_s0, 4  ;;  %s480_s7 = int_to_ptr.vmem [resolvable:$true] %s479_s7 }
  0x3e   :  { %v256_v52 = vrot.slane %v255_v30, 1  ;;  %v264_v56 = vrot.slane %v263_v20, 1  ;;  %v272_v34 = vrot.slane %v271_v10, 1  ;;  %v280_v24 = vrot.slane %v279_v21, 1  ;;  %s488_s8 = scalar_lea.vmem %s480_s7, 384  ;;  %p493_p1 = scmp.lt.s32.totalorder %s480_s7, %s480_s7 }
  0x3f   :  { %v326_v37 = vunpack.c.h.bf16 %v308_v31  ;;  %v327_v12 = vunpack.c.l.bf16 %v309_v47  ;;  %v328_v53 = vunpack.c.l.bf16 %v310_v41  ;;  %v329_v26 = vunpack.c.h.bf16 %v310_v41  ;;  %p489_p0 = scmp.ne.s32.totalorder %s480_s7, %s488_s8  ;;  %p494_p2 = scmp.lt.s32.totalorder %s488_s8, %s488_s8 }
  0x40   :  { %v257_v28 = vadd.f32 %v256_v52, %v255_v30  ;;  %v265_v35 = vadd.f32 %v264_v56, %v263_v20  ;;  %v273_v40 = vadd.f32 %v272_v34, %v271_v10  ;;  %v281_v19 = vadd.f32 %v280_v24, %v279_v21 }
  0x41   :  { %v330_v44 = vunpack.c.l.bf16 %v311_v25  ;;  %v331_v17 = vunpack.c.l.bf16 %v312_v58  ;;  %v332_v2 = vunpack.c.h.bf16 %v312_v58  ;;  %v333_v5 = vunpack.c.l.bf16 %v313_v42  ;;  %p495_p3 = por %p494_p2, %p493_p1 }
  0x42   :  { %v334_v0 = vunpack.c.l.bf16 %v314_v3  ;;  %v335_v6 = vunpack.c.h.bf16 %v314_v3  ;;  %v336_v51 = vunpack.c.l.bf16 %v315_v50  ;;  %v337_v14 = vunpack.c.l.bf16 %v316_v32 }
  0x43   :  { %v338_v30 = vunpack.c.h.bf16 %v316_v32  ;;  %v339_v20 = vunpack.c.l.bf16 %v317_v1  ;;  %v340_v10 = vunpack.c.l.bf16 %v318_v8  ;;  %v341_v21 = vunpack.c.h.bf16 %v318_v8  ;;  %p496_p4 = pnand %p495_p3, %p489_p0 }
  0x44   :  { %v342_v38 = vunpack.c.l.bf16 %v319_v13  ;;  %v343_v22 = vunpack.c.l.bf16 %v320_v46  ;;  %v344_v31 = vunpack.c.h.bf16 %v320_v46  ;;  %v345_v47 = vunpack.c.l.bf16 %v321_v11 }
  0x45   :  { %v346_v52 = vsub.f32 %v745_v7, %v322_v43  ;;  %v347_v56 = vsub.f32 %v747_v9, %v323_v59  ;;  %v348_v34 = vsub.f32 %v749_v63, %v324_v49  ;;  %v349_v24 = vsub.f32 %v751_v15, %v325_v54 }
  0x46   :  { %v350_v41 = vsub.f32 %v765_v61, %v326_v37  ;;  %v351_v25 = vsub.f32 %v767_v62, %v327_v12  ;;  %v352_v58 = vsub.f32 %v769_v4, %v328_v53  ;;  %v353_v42 = vsub.f32 %v771_v18, %v329_v26 }
  0x47   :  { %v354_v3 = vsub.f32 %v801_v23, %v330_v44  ;;  %v355_v50 = vsub.f32 %v803_v36, %v331_v17  ;;  %v356_v7 = vsub.f32 %v805_v55, %v332_v2  ;;  %v357_v9 = vsub.f32 %v807_v16, %v333_v5 }
  0x48   :  { %v358_v63 = vsub.f32 %v821_v27, %v334_v0  ;;  %v359_v15 = vsub.f32 %v823_v60, %v335_v6  ;;  %v360_v61 = vsub.f32 %v825_v57, %v336_v51  ;;  %v361_v62 = vsub.f32 %v827_v39, %v337_v14 }
  0x49   :  { %v362_v4 = vsub.f32 %v866_v29, %v338_v30  ;;  %v363_v18 = vsub.f32 %v868_v33, %v339_v20  ;;  %v364_v23 = vsub.f32 %v870_v48, %v340_v10  ;;  %v365_v36 = vsub.f32 %v872_v45, %v341_v21 }
  0x4a   :  { %v366_v43 = vsub.f32 %v257_v28, %v342_v38  ;;  %v367_v55 = vsub.f32 %v265_v35, %v343_v22  ;;  %v368_v59 = vsub.f32 %v273_v40, %v344_v31  ;;  %v369_v16 = vsub.f32 %v281_v19, %v345_v47 }
  0x4b   :  { %v370_v49 = vmul.f32 0.125, %v346_v52  ;;  %v371_v27 = vmul.f32 0.125, %v347_v56  ;;  %v372_v54 = vmul.f32 0.125, %v348_v34  ;;  %v373_v60 = vmul.f32 0.125, %v349_v24 }
  0x4c   :  { %v374_v32 = vmul.f32 0.125, %v350_v41  ;;  %v375_v57 = vmul.f32 0.125, %v351_v25  ;;  %v376_v1 = vmul.f32 0.125, %v352_v58  ;;  %v377_v39 = vmul.f32 0.125, %v353_v42 }
  0x4d   :  { %v378_v8 = vmul.f32 0.125, %v354_v3  ;;  %v379_v29 = vmul.f32 0.125, %v355_v50  ;;  %v380_v37 = vmul.f32 0.125, %v356_v7  ;;  %v381_v33 = vmul.f32 0.125, %v357_v9 }
  0x4e   :  { %v382_v12 = vmul.f32 0.125, %v358_v63  ;;  %v383_v48 = vmul.f32 0.125, %v359_v15  ;;  %v384_v53 = vmul.f32 0.125, %v360_v61  ;;  %v385_v45 = vmul.f32 0.125, %v361_v62 }
  0x4f   :  { %v386_v28 = vmul.f32 0.125, %v362_v4  ;;  %v387_v35 = vmul.f32 0.125, %v363_v18  ;;  %v388_v40 = vmul.f32 0.125, %v364_v23  ;;  %v389_v19 = vmul.f32 0.125, %v365_v36 }
  0x50   :  { %v390_v26 = vmul.f32 0.125, %v366_v43  ;;  %v391_v13 = vmul.f32 0.125, %v367_v55  ;;  %v392_v46 = vmul.f32 0.125, %v368_v59  ;;  %v393_v11 = vmul.f32 0.125, %v369_v16 }
  0x51   :  { %v418_v44 = vrot.slane %v373_v60, 7  ;;  %v421_v17 = vrot.slane %v376_v1, 6  ;;  %v424_v2 = vrot.slane %v379_v29, 5  ;;  %v427_v5 = vrot.slane %v382_v12, 4 }
  0x52   :  { %v430_v6 = vrot.slane %v385_v45, 3  ;;  %vm431_vm5 = vcmask 1045509   ;;  %v433_v51 = vrot.slane %v388_v40, 2  ;;  %vm434_vm6 = vcmask 1046534  }
  0x53   :  { %v420_v0 = vsel %vm419_vm1, %v418_v44, %v370_v49  ;;  %v436_v30 = vrot.slane %v391_v13, 1  ;;  %vm437_vm7 = vcmask 1047559   ;;  %v439_v10 = vrot.slane %v374_v32, 7 }
  0x54   :  { %v423_v14 = vsel %vm422_vm2, %v421_v17, %v420_v0  ;;  %v441_v21 = vrot.slane %v377_v39, 6  ;;  %v443_v38 = vrot.slane %v380_v37, 5  ;;  %v445_v31 = vrot.slane %v383_v48, 4 }
  0x55   :  { %v426_v20 = vsel %vm425_vm3, %v424_v2, %v423_v14  ;;  %v447_v47 = vrot.slane %v386_v28, 3  ;;  %v449_v52 = vrot.slane %v389_v19, 2  ;;  %v440_v34 = vsel %vm419_vm1, %v439_v10, %v371_v27 }
  0x56   :  { %v429_v22 = vsel %vm428_vm4, %v427_v5, %v426_v20  ;;  %v451_v24 = vrot.slane %v392_v46, 1  ;;  %v453_v41 = vrot.slane %v375_v57, 7  ;;  %v442_v58 = vsel %vm422_vm2, %v441_v21, %v440_v34 }
  0x57   :  { %v432_v56 = vsel %vm431_vm5, %v430_v6, %v429_v22  ;;  %v455_v42 = vrot.slane %v378_v8, 6  ;;  %v457_v3 = vrot.slane %v381_v33, 5  ;;  %v444_v7 = vsel %vm425_vm3, %v443_v38, %v442_v58 }
  0x58   :  { %v435_v25 = vsel %vm434_vm6, %v433_v51, %v432_v56  ;;  %v454_v9 = vsel %vm419_vm1, %v453_v41, %v372_v54  ;;  %v459_v63 = vrot.slane %v384_v53, 4  ;;  %v446_v15 = vsel %vm428_vm4, %v445_v31, %v444_v7 }
  0x59   :  { %v438_v50 = vsel %vm437_vm7, %v436_v30, %v435_v25  ;;  %v456_v61 = vsel %vm422_vm2, %v455_v42, %v454_v9  ;;  %v461_v62 = vrot.slane %v387_v35, 3  ;;  %v463_v4 = vrot.slane %v390_v26, 2 }
  0x5a   :  { %470 = vst [vmem:[#allocation2] sm:$0xff] %v438_v50  ;;  %v448_v18 = vsel %vm431_vm5, %v447_v47, %v446_v15  ;;  %v458_v23 = vsel %vm425_vm3, %v457_v3, %v456_v61  ;;  %v465_v36 = vrot.slane %v393_v11, 1 }
  0x5b   :  { %v450_v43 = vsel %vm434_vm6, %v449_v52, %v448_v18  ;;  %v460_v55 = vsel %vm428_vm4, %v459_v63, %v458_v23 }
  0x5c   :  { %v452_v59 = vsel %vm437_vm7, %v451_v24, %v450_v43  ;;  %v462_v16 = vsel %vm431_vm5, %v461_v62, %v460_v55 }
  0x5d   :  { %v464_v49 = vsel %vm434_vm6, %v463_v4, %v462_v16  ;;  %471 = vst [vmem:[#allocation2 + $0x8] sm:$0xff] %v452_v59 }
  0x5e   :  { %v466_v27 = vsel %vm437_vm7, %v465_v36, %v464_v49 }
  0x5f   :  { %472 = vst [vmem:[#allocation2 + $0x10] sm:$0xff] %v466_v27 }
  0x60   :  { %499 = shalt.err (!%p496_p4)
}
  0x61   :  { %s500_s11 = scalar_lea.hbm %s967_s1, 384 }
  0x62   :  { %p501_p5 = scmp.ne.s32.totalorder %s967_s1, %s500_s11  ;;  %p504_p6 = scmp.lt.u32.totalorder %s500_s11, %s967_s1 }
  0x64   :  { %p506_p7 = pnand %p504_p6, %p501_p5 }
  0x66   :  { %509 = shalt.err (!%p506_p7)
}
  0x67   :  { %482 = dma.vmem_to_hbm [thread:$0]  %s480_s7, 384, %s967_s1, [#allocation3]  }
  0x68   :  { %510 = dma.done.wait [#allocation3], 384  }
  0x69   :  { %511 = vsyncadd [#allocation3], 4294966912 }
  0x6a   :  { %486 = vsyncpa [#allocation3], 1 }

</bundles_post_ra>
